<compile_context>
chip_gen: v7x
topology: tpu7x:2x2x1
jax: 0.10.0
libtpu: 0.0.40
codegen_flags: <defaults>
</compile_context>

<pallas_src>
import functools

import jax
import jax.numpy as jnp
from jax import lax
from jax.experimental import pallas as pl
from jax.experimental.pallas import tpu as pltpu


def _round_up(x, m):
    return (x + m - 1) // m * m


def _pick_row_tile(oh, ow, max_rows, want_multi):
    """Largest divisor `th` of OH with th*OW rows <= max_rows and th*OW a
    multiple of 16 (preferred) or 8; falls back to the full OH (always legal
    as a block dim).  `want_multi` caps th so the grid has >= 2 steps (v7x)."""
    limit = max(1, min(oh, max_rows // max(ow, 1)))
    if want_multi and oh > 1:
        limit = max(1, min(limit, oh // 2))
    divs = [d for d in range(1, limit + 1) if oh % d == 0]
    aligned16 = [d for d in divs if (d * ow) % 16 == 0]
    aligned8 = [d for d in divs if (d * ow) % 8 == 0]
    if aligned16:
        return max(aligned16)
    if aligned8:
        return max(aligned8)
    return oh


def _quant_mix_kernel(thr_ref, inv_scale_ref, post_ref, w_ref, out_ref, acc_ref):
    """Accumulate one bit-branch's de-quantized, softmax-scaled weights.

    Grid: (C_out blocks ["parallel"], n_bits ["arbitrary" reduction axis]).
      thr/inv_scale/post : SMEM [n_bits] f32
          thr_i       = max|W_i|  (GLOBAL max, precomputed in the wrapper)
          inv_scale_i = 1 / (thr_i / (2^(b_i-1) - 1))
          post_i      = sw_i * scale_i   (softmax coeff folded into de-quant)
      w_ref   : VMEM [K, c_blk] f32   branch i's weights (K = kh*kw*c_in)
      out_ref : VMEM [K, c_blk] bf16  mixed weight (stored at the last bit)
      acc_ref : VMEM [K, c_blk] f32   scratch accumulator
    """
    i = pl.program_id(1)
    thr = thr_ref[i]
    q = jnp.round(jnp.clip(w_ref[...], -thr, thr) * inv_scale_ref[i]) * post_ref[i]

    @pl.when(i == 0)
    def _():
        acc_ref[...] = jnp.zeros_like(acc_ref)

    acc_ref[...] += q

    @pl.when(i == pl.num_programs(1) - 1)
    def _():
        out_ref[...] = acc_ref[...].astype(out_ref.dtype)


def _conv_taps_kernel(x_ref, w_ref, o_ref, acc_ref, *, kh, kw, stride, th, ow, c_in):
    """One (batch, output-row-band) tile of the conv; taps accumulated in-kernel.

    x_ref   : VMEM [H_pad, W_pad, c_in] bf16 — full padded image of batch n
              (block index constant across the row-bands of n -> no re-fetch).
    w_ref   : VMEM [kh*kw, c_in, c_out_p] bf16 mixed weight (constant block).
    o_ref   : VMEM [th*ow, c_out_p] out_dtype.
    acc_ref : VMEM [th*ow, c_out_p] f32 scratch.
    """
    row0 = pl.program_id(1) * (th * stride)
    for t in range(kh * kw):
        ky, kx = divmod(t, kw)
        if stride == 1:
            xs = x_ref[pl.ds(row0 + ky, th), pl.ds(kx, ow), :]
        else:
            xs = x_ref[pl.ds(row0 + ky, th, stride), pl.ds(kx, ow, stride), :]
        contrib = jnp.dot(xs.reshape(th * ow, c_in), w_ref[t],
                          preferred_element_type=jnp.float32)
        if t == 0:
            acc_ref[...] = contrib
        else:
            acc_ref[...] += contrib
    o_ref[...] = acc_ref[...].astype(o_ref.dtype)


def mix_quant_conv2d(x, weights, alpha, bits, *, stride=1, padding=1,
                     tile_rows=512, out_dtype=jnp.bfloat16, nchw_out=True):
    """x: [N, C_in, H, W] (NCHW); weights: [n_bits, C_out, C_in, kH, kW]."""
    n_bits, c_out, c_in, kh, kw = weights.shape
    n, _, h, w = x.shape
    assert n_bits == len(bits)
    for b in bits:
        assert 1 < int(b) < 32, "bit width must be in (1, 32) (levels > 0)"

    oh = (h + 2 * padding - kh) // stride + 1
    ow = (w + 2 * padding - kw) // stride + 1
    taps = kh * kw
    k = taps * c_in

    # Lane-dense output channels (256-aligned when the 2x256 MXU can use it).
    c_align = 256 if c_out >= 256 else 128
    c_out_p = _round_up(c_out, c_align)

    # ---- Quant parameters, computed ONCE and globally (thr must be the max
    # over the *whole* per-bit tensor regardless of tiling). thr==0 guarded. ----
    sw = jax.nn.softmax(alpha.astype(jnp.float32))
    wf = weights.astype(jnp.float32)
    thr = jnp.max(jnp.abs(wf.reshape(n_bits, -1)), axis=1)             # [n_bits]
    levels = jnp.asarray([float(2 ** (int(b) - 1) - 1) for b in bits],
                         dtype=jnp.float32)
    safe_thr = jnp.where(thr > 0.0, thr, 1.0)
    scale = safe_thr / levels
    inv_scale = 1.0 / scale
    post = sw * scale

    # Weights -> [n_bits, K, C_out_p] with K ordered (ky, kx, c_in).
    w_kc = wf.transpose(0, 3, 4, 2, 1).reshape(n_bits, k, c_out)
    w_kc = jnp.pad(w_kc, ((0, 0), (0, 0), (0, c_out_p - c_out)))       # tiny

    # ---- Kernel 1 (cold): quantize + mix -> bf16 [K, C_out_p], tiled over
    # (C_out blocks, bits) so the f32 stack never sits whole in VMEM. ----
    c_blk = 128
    mix_w = pl.pallas_call(
        _quant_mix_kernel,
        out_shape=jax.ShapeDtypeStruct((k, c_out_p), jnp.bfloat16),
        grid=(c_out_p // c_blk, n_bits),
        in_specs=[
            pl.BlockSpec(memory_space=pltpu.MemorySpace.SMEM),   # thr
            pl.BlockSpec(memory_space=pltpu.MemorySpace.SMEM),   # inv_scale
            pl.BlockSpec(memory_space=pltpu.MemorySpace.SMEM),   # post
            pl.BlockSpec((None, k, c_blk), lambda j, i: (i, 0, j)),
        ],
        out_specs=pl.BlockSpec((k, c_blk), lambda j, i: (0, j)),
        scratch_shapes=[pltpu.VMEM((k, c_blk), jnp.float32)],
        compiler_params=pltpu.CompilerParams(
            dimension_semantics=("parallel", "arbitrary")),
    )(thr, inv_scale, post, w_kc)
    w_taps = mix_w.reshape(taps, c_in, c_out_p)       # [kh*kw, c_in, c_out_p]

    # ---- Input: NHWC, spatial zero-pad, bf16. Single pass over x; no im2col
    # buffer and no extra full-size pad copies (the K pad is gone entirely). ----
    x_nhwc = x.transpose(0, 2, 3, 1).astype(jnp.bfloat16)
    xp = jnp.pad(x_nhwc,
                 ((0, 0), (padding, padding), (padding, padding), (0, 0)))
    h_pad, w_pad = h + 2 * padding, w + 2 * padding

    th = _pick_row_tile(oh, ow, tile_rows, want_multi=(n == 1))
    m_tile = th * ow

    # ---- Kernel 2 (hot): fused im2col + matmul. Grid = (N, OH row-bands),
    # taps unrolled in-kernel, f32 VMEM accumulator, bf16 lane-dense output. ----
    # TODO(synk): tile c_in / c_out_p with an extra "arbitrary" K axis (P3) for
    # very large layers so the weight + image blocks stay inside v5e/v7x VMEM.
    kernel = functools.partial(_conv_taps_kernel, kh=kh, kw=kw, stride=stride,
                               th=th, ow=ow, c_in=c_in)
    out_flat = pl.pallas_call(
        kernel,
        out_shape=jax.ShapeDtypeStruct((n, oh * ow, c_out_p), out_dtype),
        grid=(n, oh // th),
        in_specs=[
            # Full padded image of batch n; same block for every row-band of n.
            pl.BlockSpec((None, h_pad, w_pad, c_in), lambda b, r: (b, 0, 0, 0)),
            # Mixed weight: block index never changes -> DMA'd only once.
            # TODO(synk): pipeline_mode=pl.Buffered(1) to drop the unused 2nd
            # weight buffer (VMEM headroom for large c_in*c_out on v5e/v7x).
            pl.BlockSpec((taps, c_in, c_out_p), lambda b, r: (0, 0, 0)),
        ],
        out_specs=pl.BlockSpec((None, m_tile, c_out_p), lambda b, r: (b, r, 0)),
        scratch_shapes=[pltpu.VMEM((m_tile, c_out_p), jnp.float32)],
        compiler_params=pltpu.CompilerParams(
            dimension_semantics=("parallel", "parallel")),
    )(xp, w_taps)

    # Strip channel padding; NHWC -> NCHW only if the caller needs it.
    out = out_flat[:, :, :c_out].reshape(n, oh, ow, c_out)
    if nchw_out:
        out = out.transpose(0, 3, 1, 2)
    return out


def _reference(x, weights, alpha, bits, *, stride=1, padding=1):
    """Pure-JAX f32 reference of the PyTorch forward (sanity check)."""
    sw = jax.nn.softmax(alpha.astype(jnp.float32))
    mix = jnp.zeros(weights.shape[1:], jnp.float32)
    for i, bit in enumerate(bits):
        w = weights[i].astype(jnp.float32)
        thr = jnp.max(jnp.abs(w))
        scale = thr / (2 ** (int(bit) - 1) - 1)
        wq = jnp.round(jnp.clip(w, -thr, thr) / scale) * scale
        mix = mix + sw[i] * wq
    return lax.conv_general_dilated(
        x.astype(jnp.float32), mix,
        window_strides=(stride, stride),
        padding=[(padding, padding), (padding, padding)],
        dimension_numbers=("NCHW", "OIHW", "NCHW"))


if __name__ == "__main__":
    key = jax.random.PRNGKey(0)
    bits = (2, 4, 8)
    N, C_IN, C_OUT, H, W, K = 2, 4, 8, 16, 16, 3

    kx_, kw_ = jax.random.split(key)
    x = jax.random.normal(kx_, (N, C_IN, H, W), dtype=jnp.float32)

    # Deterministic init of each nn.Conv2d branch's weight (one per bit-width).
    wkeys = jax.random.split(kw_, len(bits))
    weights = jnp.stack(
        [0.1 * jax.random.normal(k, (C_OUT, C_IN, K, K), dtype=jnp.float32)
         for k in wkeys])

    # alpha_weight.data.fill_(0.01)
    alpha = jnp.full((len(bits),), 0.01, dtype=jnp.float32)

    out = mix_quant_conv2d(x, weights, alpha, bits, stride=1, padding=1)
    out = jax.block_until_ready(out)

    ref = _reference(x, weights, alpha, bits, stride=1, padding=1)
    assert out.shape == (N, C_OUT, H, W), out.shape
    out_f32 = out.astype(jnp.float32)
    # Tolerances account for bf16 inputs / bf16 output (f32 MXU accumulation).
    assert jnp.allclose(out_f32, ref, rtol=2e-2, atol=2e-2), float(
        jnp.max(jnp.abs(out_f32 - ref)))

    print("KERNEL_OK")
</pallas_src>

<mosaic_0001>
module attributes {stable_mosaic.version = 11 : i64} {
  func.func @_quant_mix_kernel(%arg0: i32, %arg1: i32, %arg2: memref<3xf32, #tpu.memory_space<smem>>, %arg3: memref<3xf32, #tpu.memory_space<smem>>, %arg4: memref<3xf32, #tpu.memory_space<smem>>, %arg5: memref<1x36x128xf32, #tpu.memory_space<vmem>>, %arg6: memref<36x128xbf16, #tpu.memory_space<vmem>>, %arg7: memref<36x128xf32, #tpu.memory_space<vmem>>) attributes {dimension_semantics = [#tpu.dimension_semantics<parallel>, #tpu.dimension_semantics<arbitrary>], iteration_bounds = array<i64: 1, 3>, scalar_prefetch = 0 : i64, scratch_operands = 1 : i64, tpu.core_type = #tpu.core_type<tc>, window_params = [{transform_indices = @transform_0, window_bounds = array<i64: 3>}, {transform_indices = @transform_1, window_bounds = array<i64: 3>}, {transform_indices = @transform_2, window_bounds = array<i64: 3>}, {transform_indices = @transform_3, window_bounds = array<i64: 1, 36, 128>}, {transform_indices = @transform_4, window_bounds = array<i64: 36, 128>}]} {
    %0 = arith.index_cast %arg1 : i32 to index
    %1 = memref.load %arg2[%0] : memref<3xf32, #tpu.memory_space<smem>>
    %c0 = arith.constant 0 : index
    %c0_0 = arith.constant 0 : index
    %c0_1 = arith.constant 0 : index
    %2 = vector.load %arg5[%c0, %c0_0, %c0_1] : memref<1x36x128xf32, #tpu.memory_space<vmem>>, vector<1x36x128xf32>
    %3 = vector.shape_cast %2 : vector<1x36x128xf32> to vector<36x128xf32>
    %cst = arith.constant 0.000000e+00 : f32
    %4 = arith.subf %cst, %1 : f32
    %5 = vector.broadcast %4 : f32 to vector<36x128xf32>
    %6 = arith.maximumf %5, %3 : vector<36x128xf32>
    %7 = vector.broadcast %1 : f32 to vector<36x128xf32>
    %8 = arith.minimumf %7, %6 : vector<36x128xf32>
    %9 = arith.index_cast %arg1 : i32 to index
    %10 = memref.load %arg3[%9] : memref<3xf32, #tpu.memory_space<smem>>
    %11 = vector.broadcast %10 : f32 to vector<36x128xf32>
    %12 = arith.mulf %8, %11 : vector<36x128xf32>
    %13 = math.roundeven %12 : vector<36x128xf32>
    %14 = arith.index_cast %arg1 : i32 to index
    %15 = memref.load %arg4[%14] : memref<3xf32, #tpu.memory_space<smem>>
    %16 = vector.broadcast %15 : f32 to vector<36x128xf32>
    %17 = arith.mulf %13, %16 : vector<36x128xf32>
    %c0_i32 = arith.constant 0 : i32
    %18 = arith.cmpi eq, %arg1, %c0_i32 : i32
    %19 = arith.extui %18 : i1 to i32
    %c0_i32_2 = arith.constant 0 : i32
    %20 = arith.cmpi ne, %19, %c0_i32_2 : i32
    scf.if %20 {
      %cst_8 = arith.constant 0.000000e+00 : f32
      %27 = vector.broadcast %cst_8 : f32 to vector<36x128xf32>
      %c0_9 = arith.constant 0 : index
      %c0_10 = arith.constant 0 : index
      %28 = vector.load %arg7[%c0_9, %c0_10] : memref<36x128xf32, #tpu.memory_space<vmem>>, vector<36x128xf32>
      tpu.vector_store %arg7[%c0_9, %c0_10], %27 {strides = array<i32>} : memref<36x128xf32, #tpu.memory_space<vmem>>, vector<36x128xf32>,
    } else {
    }
    %c0_3 = arith.constant 0 : index
    %c0_4 = arith.constant 0 : index
    %21 = vector.load %arg7[%c0_3, %c0_4] : memref<36x128xf32, #tpu.memory_space<vmem>>, vector<36x128xf32>
    %22 = arith.addf %21, %17 : vector<36x128xf32>
    %c0_5 = arith.constant 0 : index
    %c0_6 = arith.constant 0 : index
    %23 = vector.load %arg7[%c0_5, %c0_6] : memref<36x128xf32, #tpu.memory_space<vmem>>, vector<36x128xf32>
    tpu.vector_store %arg7[%c0_5, %c0_6], %22 {strides = array<i32>} : memref<36x128xf32, #tpu.memory_space<vmem>>, vector<36x128xf32>,
    %c2_i32 = arith.constant 2 : i32
    %24 = arith.cmpi eq, %arg1, %c2_i32 : i32
    %25 = arith.extui %24 : i1 to i32
    %c0_i32_7 = arith.constant 0 : i32
    %26 = arith.cmpi ne, %25, %c0_i32_7 : i32
    scf.if %26 {
      %c0_8 = arith.constant 0 : index
      %c0_9 = arith.constant 0 : index
      %27 = vector.load %arg7[%c0_8, %c0_9] : memref<36x128xf32, #tpu.memory_space<vmem>>, vector<36x128xf32>
      %28 = arith.truncf %27 : vector<36x128xf32> to vector<36x128xbf16>
      %c0_10 = arith.constant 0 : index
      %c0_11 = arith.constant 0 : index
      %29 = vector.load %arg6[%c0_10, %c0_11] : memref<36x128xbf16, #tpu.memory_space<vmem>>, vector<36x128xbf16>
      tpu.vector_store %arg6[%c0_10, %c0_11], %28 {strides = array<i32>} : memref<36x128xbf16, #tpu.memory_space<vmem>>, vector<36x128xbf16>,
    } else {
    }
    return
  }
  func.func @transform_0(%arg0: i32, %arg1: i32) -> i32 {
    %c0_i32 = arith.constant 0 : i32
    %c0_i32_0 = arith.constant 0 : i32
    return %c0_i32 : i32
  }
  func.func @transform_1(%arg0: i32, %arg1: i32) -> i32 {
    %c0_i32 = arith.constant 0 : i32
    %c0_i32_0 = arith.constant 0 : i32
    return %c0_i32 : i32
  }
  func.func @transform_2(%arg0: i32, %arg1: i32) -> i32 {
    %c0_i32 = arith.constant 0 : i32
    %c0_i32_0 = arith.constant 0 : i32
    return %c0_i32 : i32
  }
  func.func @transform_3(%arg0: i32, %arg1: i32) -> (i32, i32, i32) {
    %c0_i32 = arith.constant 0 : i32
    %c0_i32_0 = arith.constant 0 : i32
    return %arg1, %c0_i32, %arg0 : i32, i32, i32
  }
  func.func @transform_4(%arg0: i32, %arg1: i32) -> (i32, i32) {
    %c0_i32 = arith.constant 0 : i32
    %c0_i32_0 = arith.constant 0 : i32
    return %c0_i32, %arg0 : i32, i32
  }
}

</mosaic_0001>

<bundles_post_ra>
// kernel: tpu_custom_call.1
= control target key start
LH: loop header
LB: loop body
LE: loop exit
PB: predicated region body
PF: predicated region fallthrough
CT: control target
= control target key end

     0   :  { %9 = vsyncpa [#allocation6], 0  ;;  %s1035_s0 = inlined_call_operand.hbm [shape: f32[3], index: 0, kind: input, shape index: {}]   ;;  %s1036_s1 = inlined_call_operand.vmem [shape: f32[3], index: 1, kind: input, shape index: {}]   ;;  %s1037_s2 = inlined_call_operand.vmem [shape: f32[3], index: 2, kind: input, shape index: {}]   ;;  %s1038_s3 = inlined_call_operand.hbm [shape: f32[3,36,128], index: 3, kind: input, shape index: {}]   ;;  %s1039_s4 = inlined_call_operand.hbm [shape: bf16[36,128], index: 4, kind: output, shape index: {}]  }
   0x1   :  { %10 = vsyncpa [#allocation7], 0 }
   0x2   :  { %11 = vsyncpa [#allocation10], 0 }
   0x3   :  { %12 = vsyncpa [#allocation4], 0 }
   0x4   :  { %14 = vsyncpa [#allocation4 + $0x1], 0 }
   0x5   :  { %15 = vsyncpa [#allocation5], 0  ;;  %s813_s15 = smov 0   ;;  %s815_s16 = smov 0  }
   0x6   :  { %s817_s17 = smov 0   ;;  %s819_s18 = smov 0  }
   0x7   :  { %s821_s19 = smov 0   ;;  %s823_s20 = smov 0  }
   0x8 LB: > { %s467_s21 = sadd.s32 4294967295, %s776_s20   ;;  %p118_p0 = scmp.ne.s32.totalorder %s760_s16, %s756_s15  ;;  %s776_s20 = sphi %s823_s20, %s21_s20   ;;  %s772_s19 = sphi %s821_s19, %s1055_s19   ;;  %s768_s18 = sphi %s819_s18, %s1054_s18   ;;  %s764_s17 = sphi %s817_s17, %s1053_s17   ;;  %s760_s16 = sphi %s815_s16, %s1052_s16   ;;  %s756_s15 = sphi %s813_s15, %s1051_s15  }
   0x9   : > { %p845_p1 = scmp.eq.s32.totalorder %s467_s21, 0  ;;  %p468_p2 = scmp.ge.s32.totalorder %s776_s20, 1 }
   0xa   : > { %p155_p3 = scmp.lt.s32.totalorder %s776_s20, 4  ;;  %s177_s27 = sshll.u32 %s1036_s1, 4  ;;  %s178_s27 = int_to_ptr.vmem [resolvable:$true] %s177_s27 }
   0xb   : > { %s1043_s22 = scalar_select %p845_p1, 1, 0 }
   0xc   : > { %p853_p4 = por %p845_p1, %p118_p0  ;;  %p857_p5 = pnand %p468_p2, %p155_p3 }
   0xd   : > { %s188_s30 = sshll.u32 %s1037_s2, 4  ;;  %s611_s8 = scalar_lea.hbm %s1035_s0, 16  ;;  %s875_s30 = int_to_ptr.vmem [resolvable:$true] %s188_s30 }
   0xe   : > { %s1044_s23 = scalar_select %p853_p4, 1, 0 }
   0xf   : > { %p531_p6 = pneg %p857_p5  ;;  %p612_p8 = scmp.ne.s32.totalorder %s1035_s0, %s611_s8 }
  0x10   : > { %p618_p12 = scmp.lt.u32.totalorder %s611_s8, %s1035_s0 }
  0x11   : > { %p871_p7 = pnand %p531_p6, %p845_p1 }
  0x13   : > { %p613_p9 = pneg %p871_p7 }
  0x15   : > { %p614_p10 = pnand %p613_p9, %p612_p8 }
  0x17   : > { %p615_p11 = pneg %p614_p10 }
  0x19   : > { %p620_p13 = pnand %p618_p12, %p615_p11 }
  0x1b   : > { %623 = shalt.err (!%p620_p13)
}
  0x1c   : > { %s778_s13 = smov [#allocation3]   ;;  %s624_s25 = scalar_lea.vmem %s178_s27, 16 }
  0x1d   : > { %534 = dma.hbm_to_smem (!%p871_p7), %s1035_s0, 16, %s778_s13, [#allocation6]  }
  0x1e   : > { %p625_p0 = scmp.ne.s32.totalorder %s178_s27, %s624_s25  ;;  %p632_p6 = scmp.lt.s32.totalorder %s178_s27, %s178_s27 }
  0x1f   : > { %p633_p8 = scmp.lt.s32.totalorder %s624_s25, %s624_s25 }
  0x20   : > { %p627_p2 = pnand %p625_p0, %p613_p9 }
  0x21   : > { %p634_p10 = por %p633_p8, %p632_p6 }
  0x22   : > { %p628_p3 = pneg %p627_p2 }
  0x24   : > { %p635_p4 = pnand %p634_p10, %p628_p3 }
  0x26   : > { %638 = shalt.err (!%p635_p4)
}
  0x27   : > { %s779_s26 = smov [#allocation8]   ;;  %s639_s28 = scalar_lea.vmem %s875_s30, 16 }
  0x28   : > { %537 = dma.vmem_to_smem (!%p871_p7), %s178_s27, 16, %s779_s26, [#allocation7]  }
  0x29   : > { %p640_p11 = scmp.ne.s32.totalorder %s875_s30, %s639_s28  ;;  %p647_p0 = scmp.lt.s32.totalorder %s875_s30, %s875_s30 }
  0x2a   : > { %p648_p2 = scmp.lt.s32.totalorder %s639_s28, %s639_s28 }
  0x2b   : > { %p642_p12 = pnand %p640_p11, %p613_p9 }
  0x2c   : > { %p649_p6 = por %p648_p2, %p647_p0 }
  0x2d   : > { %p643_p13 = pneg %p642_p12 }
  0x2f   : > { %p650_p3 = pnand %p649_p6, %p643_p13 }
  0x31   : > { %653 = shalt.err (!%p650_p3)
}
  0x32   : > { %s780_s29 = smov [#allocation9]   ;;  %s30_s27 = sadd.s32 1, %s772_s19 }
  0x33   : > { %540 = dma.vmem_to_smem (!%p871_p7), %s875_s30, 16, %s780_s29, [#allocation10]  }
  0x34   : > { %p31_p4 = scmp.ge.s32.totalorder %s30_s27, 3  ;;  %s105_s6 = sadd.s32 1, %s764_s17 }
  0x35   : > { %p112_p9 = scmp.ne.s32.totalorder %s764_s17, %s760_s16  ;;  %p113_p8 = scmp.eq.s32.totalorder %s776_s20, 0 }
  0x36   : > { %s1057_s27 = smov (%p31_p4, %s30_s27), 0  ;;  %p548_p11 = scmp.lt.s32.totalorder %s776_s20, 3 }
  0x37   : > { %p114_p10 = por %p113_p8, %p112_p9  ;;  %s100_s5 = ssub.s32 %s772_s19, %s1057_s27 }
  0x38   : > { %s199_s7 = sand.u32 1, %s764_s17   ;;  %p103_p12 = scmp.eq.s32.totalorder %s100_s5, 0 }
  0x39   : > { %s505_s8 = smul.u32 40, %s199_s7  ;;  %p922_p13 = pnand %p548_p11, %p114_p10 }
  0x3a   : > { %s927_s30 = scalar_select %p103_p12, %s764_s17, %s105_s6  }
  0x3b   : > { %s506_s10 = smul.u32 640, %s772_s19  ;;  %s203_s11 = scalar_lea.vmem [#allocation11], %s505_s8 }
  0x3c   : > { %s211_s12 = sshll.u32 %s203_s11, 4  ;;  %s937_s25 = scalar_lea.sflag [#allocation4], %s199_s7  ;;  %s935_s12 = int_to_ptr.vmem [resolvable:$true] %s211_s12 }
  0x3d   : > { %s933_s15 = scalar_lea.hbm %s1038_s3, %s506_s10  ;;  %p656_p0 = pneg %p922_p13 }
  0x3e   : > { %s654_s26 = scalar_lea.hbm %s933_s15, 640  ;;  %s659_s6 = scalar_lea.hbm %s1038_s3, 1920 }
  0x3f   : > { %p655_p7 = scmp.ne.s32.totalorder %s933_s15, %s654_s26  ;;  %p660_p3 = scmp.lt.u32.totalorder %s933_s15, %s1038_s3 }
  0x40   : > { %p661_p4 = scmp.lt.u32.totalorder %s659_s6, %s654_s26  ;;  %p663_p8 = scmp.lt.u32.totalorder %s654_s26, %s933_s15 }
  0x41   : > { %p657_p2 = pnand %p656_p0, %p655_p7 }
  0x42   : > { %p662_p9 = por %p661_p4, %p660_p3 }
  0x43   : > { %p658_p6 = pneg %p657_p2 }
  0x44   : > { %p664_p10 = por %p663_p8, %p662_p9 }
  0x46   : > { %p665_p11 = pnand %p664_p10, %p658_p6 }
  0x48   : > { %668 = shalt.err (!%p665_p11)
}
  0x49   : > { %s669_s7 = scalar_lea.vmem %s935_s12, 640  ;;  %s781_s10 = smov [#allocation11]  }
  0x4a   : > { %p670_p12 = scmp.ne.s32.totalorder %s935_s12, %s669_s7  ;;  %s674_s11 = sshll.u32 %s781_s10, 4  ;;  %s675_s11 = int_to_ptr.vmem [resolvable:$false] %s674_s11 }
  0x4b   : > { %s676_s13 = scalar_lea.vmem %s675_s11, 1280  ;;  %p677_p1 = scmp.lt.s32.totalorder %s935_s12, %s675_s11 }
  0x4c   : > { %p672_p7 = pnand %p670_p12, %p656_p0  ;;  %p678_p3 = scmp.lt.s32.totalorder %s676_s13, %s669_s7 }
  0x4e   : > { %p673_p2 = pneg %p672_p7  ;;  %p679_p4 = por %p678_p3, %p677_p1 }
  0x50   : > { %p680_p9 = pnand %p679_p4, %p673_p2 }
  0x52   : > { %683 = shalt.err (!%p680_p9)
}
  0x53   : > { %s782_s14 = smov 128   ;;  %s783_s26 = smov 8  }
  0x54   : > { %544 = dma.hbm_to_vmem [thread:$0]  (!%p922_p13), %s933_s15, 640, %s935_s12, %s937_s25, %s782_s14, %s782_s14, %s783_s26  }
  0x55   : > { %223 = sbr.rel (%p857_p5) target bundleno = 165 (0xa5), region = 36  ;;  %p1048_p0 = scmp.ne.s32.totalorder (!%p857_p5), %s1043_s22, 0 }
  0x5c   : > { %735 = dma.done.wait (%p1048_p0), [#allocation6], 16  }
  0x5d   : > { %737 = vsyncadd (%p1048_p0), [#allocation6], 4294967280 }
  0x5e   : > { %739 = dma.done.wait (%p1048_p0), [#allocation7], 16  }
  0x5f   : > { %741 = vsyncadd (%p1048_p0), [#allocation7], 4294967280 }
  0x60   : > { %743 = dma.done.wait (%p1048_p0), [#allocation10], 16  }
  0x61   : > { %745 = vsyncadd (%p1048_p0), [#allocation10], 4294967280  ;;  %s237_s24 = sand.u32 1, %s760_s16   ;;  %p1049_p1 = scmp.ne.s32.totalorder %s1044_s23, 0 }
  0x62   : > { %s507_s9 = smul.u32 40, %s237_s24  ;;  %s238_s12 = scalar_lea.sflag [#allocation4], %s237_s24 }
  0x64   : > { %s241_s15 = scalar_lea.vmem [#allocation11], %s507_s9 }
  0x65   : > { %747 = dma.done.wait (%p1049_p1), %s238_s12, 640  }
  0x66   : > { %749 = vsyncadd (%p1049_p1), %s238_s12, 4294966656 }
  0x67   : > { %246 = sfence }
  0x68   : > { %s262_s25 = sld [smem:[#allocation3 + %s768_s18]]  ;;  %v263_v0 = vld [vmem:[%s241_s15] sm:$0xff]  ;;  %v264_v1 = vld [vmem:[%s241_s15 + $0x8] sm:$0xff]  ;;  %v265_v2 = vld [vmem:[%s241_s15 + $0x10] sm:$0xff]  ;;  %p478_p5 = scmp.ne.s32.totalorder %s768_s18, 0 }
  0x69   : > { %s281_s28 = sld [smem:[#allocation8 + %s768_s18]]  ;;  %v266_v3 = vld [vmem:[%s241_s15 + $0x18] sm:$0xff]  ;;  %v267_v4 = vld [vmem:[%s241_s15 + $0x20] sm:$0xf]  ;;  %v784_v34 = vmov (!%p478_p5), 0.0  }
  0x6a   : > { %s293_s29 = sld [smem:[#allocation9 + %s768_s18]]  ;;  %304 = vst [vmem:[#allocation2] sm:$0xff] (!%p478_p5), %v784_v34  ;;  %305 = vst [vmem:[#allocation2 + $0x8] sm:$0xff] (!%p478_p5), %v784_v34 }
  0x6b   : > { %306 = vst [vmem:[#allocation2 + $0x10] sm:$0xff] (!%p478_p5), %v784_v34  ;;  %307 = vst [vmem:[#allocation2 + $0x18] sm:$0xff] (!%p478_p5), %v784_v34 }
  0x6c   : > { %308 = vst [vmem:[#allocation2 + $0x20] sm:$0xf] (!%p478_p5), %v784_v34 }
  0x6e   : > { %s268_s22 = ssub.f32 0.0, %s262_s25  ;;  %v275_v6 = vstv %s262_s25 }
  0x6f   : > { %v282_v12 = vstv %s281_s28 }
  0x70   : > { %v269_v5 = vstv %s268_s22  ;;  %v294_v23 = vstv %s293_s29 }
  0x71   : > { %v270_v7 = vmax.f32 %v269_v5, %v263_v0  ;;  %v271_v8 = vmax.f32 %v269_v5, %v264_v1  ;;  %v272_v9 = vmax.f32 %v269_v5, %v265_v2  ;;  %v273_v10 = vmax.f32 %v269_v5, %v266_v3 }
  0x72   : > { %v274_v11 = vmax.f32 %v269_v5, %v267_v4 }
  0x73   : > { %v276_v13 = vmin.f32 %v275_v6, %v270_v7  ;;  %v277_v14 = vmin.f32 %v275_v6, %v271_v8  ;;  %v278_v15 = vmin.f32 %v275_v6, %v272_v9  ;;  %v279_v16 = vmin.f32 %v275_v6, %v273_v10 }
  0x74   : > { %v280_v17 = vmin.f32 %v275_v6, %v274_v11  ;;  %303 = sbr.rel (%p478_p5) target bundleno = 123 (0x7b), region = 56 }
  0x75   : > { %v283_v18 = vmul.f32 %v282_v12, %v276_v13  ;;  %v284_v19 = vmul.f32 %v282_v12, %v277_v14  ;;  %v285_v20 = vmul.f32 %v282_v12, %v278_v15  ;;  %v286_v21 = vmul.f32 %v282_v12, %v279_v16 }
  0x76   : > { %v287_v22 = vmul.f32 %v282_v12, %v280_v17 }
  0x77   : > { %v508_v24 = vround.rtne.f32 %v283_v18  ;;  %v509_v25 = vround.rtne.f32 %v284_v19  ;;  %v510_v26 = vround.rtne.f32 %v285_v20  ;;  %v511_v27 = vround.rtne.f32 %v286_v21 }
  0x78   : > { %v512_v28 = vround.rtne.f32 %v287_v22 }
  0x79   : > { %v295_v29 = vmul.f32 %v508_v24, %v294_v23  ;;  %v296_v30 = vmul.f32 %v509_v25, %v294_v23  ;;  %v297_v31 = vmul.f32 %v510_v26, %v294_v23  ;;  %v298_v32 = vmul.f32 %v511_v27, %v294_v23 }
  0x7a   : > { %v299_v33 = vmul.f32 %v512_v28, %v294_v23 }
  0x7b PF: > { %v309_v35 = vld [vmem:[#allocation2] sm:$0xff]  ;;  %v310_v36 = vld [vmem:[#allocation2 + $0x8] sm:$0xff]  ;;  %v311_v37 = vld [vmem:[#allocation2 + $0x10] sm:$0xff]  ;;  %p479_p13 = scmp.ne.s32.totalorder %s768_s18, 2 }
  0x7c   : > { %v314_v38 = vadd.f32 %v309_v35, %v295_v29  ;;  %v315_v39 = vadd.f32 %v310_v36, %v296_v30  ;;  %v316_v40 = vadd.f32 %v311_v37, %v297_v31  ;;  %v312_v41 = vld [vmem:[#allocation2 + $0x18] sm:$0xff]  ;;  %v313_v42 = vld [vmem:[#allocation2 + $0x20] sm:$0xf] }
  0x7d   : > { %v317_v43 = vadd.f32 %v312_v41, %v298_v32  ;;  %v318_v44 = vadd.f32 %v313_v42, %v299_v33  ;;  %327 = sbr.rel (%p479_p13) target bundleno = 139 (0x8b), region = 60 }
  0x7e   : > { %319 = vst [vmem:[#allocation2] sm:$0xff] %v314_v38  ;;  %320 = vst [vmem:[#allocation2 + $0x8] sm:$0xff] %v315_v39 }
  0x7f   : > { %321 = vst [vmem:[#allocation2 + $0x10] sm:$0xff] %v316_v40  ;;  %322 = vst [vmem:[#allocation2 + $0x18] sm:$0xff] %v317_v43 }
  0x80   : > { %323 = vst [vmem:[#allocation2 + $0x20] sm:$0xf] %v318_v44 }
  0x85   : > { %v328_v45 = vld [vmem:[#allocation2] sm:$0xff]  ;;  %v329_v46 = vld [vmem:[#allocation2 + $0x8] sm:$0xff] }
  0x86   : > { %v330_v47 = vld [vmem:[#allocation2 + $0x10] sm:$0xff]  ;;  %v497_v48 = vpack.c.bf16 %v329_v46, %v328_v45  ;;  %v331_v49 = vld [vmem:[#allocation2 + $0x18] sm:$0xff] }
  0x87   : > { %v332_v50 = vld [vmem:[#allocation2 + $0x20] sm:$0xf]  ;;  %v502_v51 = vpack.c.bf16 %v331_v49, %v330_v47 }
  0x88   : > { %v493_v52 = vpack.c.bf16 %v332_v50, %v332_v50  ;;  %498 = vst [vmem:[#allocation12] sm:$0xff] %v497_v48  }
  0x89   : > { %504 = vst [vmem:[#allocation12 + $0x8] sm:$0xff] %v502_v51  }
  0x8a   : > { %358 = vst [vmem:[#allocation12 + $0x10] sm:$0x3] %v493_v52 }
  0x8b PF: > { %p991_p6 = scmp.eq.s32.totalorder %s467_s21, 2  ;;  %s785_s18 = smov [#allocation12]  }
  0x8c   : > { %s367_s6 = sshll.u32 %s785_s18, 4  ;;  %s368_s6 = int_to_ptr.vmem [resolvable:$true] %s367_s6 }
  0x8d   : > { %s684_s5 = scalar_lea.vmem %s368_s6, 320  ;;  %p691_p12 = scmp.lt.s32.totalorder %s368_s6, %s368_s6 }
  0x8e   : > { %p685_p8 = scmp.ne.s32.totalorder %s368_s6, %s684_s5  ;;  %p692_p7 = scmp.lt.s32.totalorder %s684_s5, %s684_s5 }
  0x90   : > { %p686_p10 = pnand %p685_p8, %p991_p6  ;;  %p693_p2 = por %p692_p7, %p691_p12 }
  0x92   : > { %p687_p11 = pneg %p686_p10 }
  0x94   : > { %p694_p3 = pnand %p693_p2, %p687_p11 }
  0x96   : > { %697 = shalt.err (!%p694_p3)
}
  0x97   : > { %s698_s21 = scalar_lea.hbm %s1039_s4, 320 }
  0x98   : > { %p699_p4 = scmp.ne.s32.totalorder %s1039_s4, %s698_s21  ;;  %p704_p1 = scmp.lt.u32.totalorder %s698_s21, %s1039_s4 }
  0x9a   : > { %p700_p9 = pnand %p699_p4, %p991_p6 }
  0x9c   : > { %p701_p0 = pneg %p700_p9 }
  0x9e   : > { %p706_p5 = pnand %p704_p1, %p701_p0 }
  0xa0   : > { %709 = shalt.err (!%p706_p5)
}
  0xa1   : > { %s786_s26 = smov 64   ;;  %s787_s24 = smov 4  }
  0xa2   : > { %528 = dma.vmem_to_hbm [thread:$0]  (%p991_p6), %s368_s6, 320, %s1039_s4, [#allocation5], %s786_s26, %s786_s26, %s787_s24  }
  0xa3   : > { %751 = dma.done.wait (%p991_p6), [#allocation5], 320  }
  0xa4   : > { %753 = vsyncadd (%p991_p6), [#allocation5], 4294966976 }
  0xa5 PF: > { %s21_s20 = sadd.s32 1, %s776_s20   ;;  %s1051_s15 = smov %s760_s16 }
  0xa6   : > { %p18_p13 = scmp.ge.s32.totalorder %s21_s20, 5   ;;  %s1052_s16 = smov %s764_s17 }
  0xa7   : > { %s1053_s17 = smov %s927_s30  ;;  %s1054_s18 = smov %s772_s19 }
  0xa8   : > { %s1055_s19 = smov %s1057_s27  ;;  %20 = sbr.rel (!%p18_p13) target bundleno = 8 (0x8), region = 96 }
  0xaf   :  { %383 = vsyncpa [#allocation4], 1 }
  0xb0   :  { %385 = vsyncpa [#allocation4 + $0x1], 1 }
  0xb1   :  { %386 = vsyncpa [#allocation5], 1 }
  0xb2   :  { %388 = vsyncpa [#allocation5 + $0x1], 1 }
  0xb3   :  { %389 = vsyncpa [#allocation6], 1 }
  0xb4   :  { %391 = vsyncpa [#allocation6 + $0x1], 1 }
  0xb5   :  { %392 = vsyncpa [#allocation7], 1 }
  0xb6   :  { %394 = vsyncpa [#allocation7 + $0x1], 1 }
  0xb7   :  { %395 = vsyncpa [#allocation10], 1 }

</bundles_post_ra>
